<compile_context>
chip_gen: v5e
topology: v5e:2x2
jax: 0.10.0
libtpu: 0.0.40
codegen_flags: <defaults>
</compile_context>

<pallas_src>
import jax
import jax.numpy as jnp
from jax.experimental import pallas as pl
from jax.experimental.pallas import tpu as pltpu

_LANES = 128
_MIB = 1024 * 1024


def _weighted_sum_kernel(mn_ref, a_ref, b_ref, c_ref):
    # mn_ref lives in SMEM (scalar prefetch): mn_ref[0] = m, mn_ref[1] = n (f32).
    m = mn_ref[0]
    n = mn_ref[1]
    a = a_ref[...].astype(jnp.float32)
    b = b_ref[...].astype(jnp.float32)
    c_ref[...] = (m * a + n * b).astype(c_ref.dtype)


def _round_up(x, mult):
    return ((x + mult - 1) // mult) * mult


def _chip_tiling():
    """Generation-aware (tile_rows, vmem_limit_bytes, core_split)."""
    vmem_bytes = None
    num_cores = 1
    try:
        info = pltpu.get_tpu_info()
        vmem_bytes = getattr(info, "vmem_capacity_bytes", None)
        num_cores = getattr(info, "num_cores", 1) or 1
    except Exception:
        pass
    if vmem_bytes is None:
        vmem_bytes = 64 * _MIB  # conservative (v7x-sized) default
    if vmem_bytes <= 64 * _MIB:
        # v7x-class: 64 MiB VMEM/TC, ~3.2 TB/s HBM, 2 TensorCores/chip.
        # 8192x128xf32 = 4 MiB/block; 3 streams x 2 buffers = 24 MiB << 40 MiB.
        return 8192, 40 * _MIB, max(num_cores, 2)
    # v5e / v6e: 128 MiB physical VMEM, 1 TC/chip; same 8192-row tile sits on
    # the flat part of the measured roofline curve and stays well in budget.
    return 8192, 48 * _MIB, max(num_cores, 1)


def _run_kernel(a2, b2, mn, out_dtype, rows):
    tile_rows, vmem_limit, n_cores = _chip_tiling()

    if rows <= tile_rows:
        if n_cores > 1 and rows >= 2 * 8:
            # Split so the "parallel" row axis can shard across both v7x
            # TensorCores (blocks stay multiples of 8; cdiv grid masks the
            # partial final block).
            block_rows = min(_round_up(pl.cdiv(rows, n_cores), 8), rows)
        else:
            block_rows = rows  # full-extent block: always legal
    else:
        block_rows = tile_rows  # multiple of 8 by construction

    grid = (pl.cdiv(rows, block_rows),)

    total = rows * _LANES
    in_item = jnp.dtype(a2.dtype).itemsize
    out_item = jnp.dtype(out_dtype).itemsize
    cost = pl.CostEstimate(
        flops=3 * total,
        transcendentals=0,
        bytes_accessed=total * (2 * in_item + out_item),
    )

    return pl.pallas_call(
        _weighted_sum_kernel,
        out_shape=jax.ShapeDtypeStruct((rows, _LANES), out_dtype),
        grid_spec=pltpu.PrefetchScalarGridSpec(
            num_scalar_prefetch=1,
            grid=grid,
            in_specs=[
                pl.BlockSpec((block_rows, _LANES), lambda i, mn_ref: (i, 0)),
                pl.BlockSpec((block_rows, _LANES), lambda i, mn_ref: (i, 0)),
            ],
            out_specs=pl.BlockSpec((block_rows, _LANES), lambda i, mn_ref: (i, 0)),
        ),
        compiler_params=pltpu.CompilerParams(
            dimension_semantics=("parallel",),
            vmem_limit_bytes=vmem_limit,
        ),
        cost_estimate=cost,
    )(mn, a2, b2)


def weighted_sum(A, B, m, n):
    """C = m * A + n * B elementwise, scalar learned params m, n (float32)."""
    assert A.shape == B.shape and A.dtype == B.dtype
    orig_shape = A.shape
    total = A.size

    # PyTorch semantics: f32 nn.Parameter * tensor type-promotes (bf16 -> f32).
    out_dtype = jnp.promote_types(A.dtype, jnp.float32)

    m_f32 = jnp.asarray(m, jnp.float32).reshape(())
    n_f32 = jnp.asarray(n, jnp.float32).reshape(())
    mn = jnp.stack([m_f32, n_f32])

    if total == 0:
        return jnp.zeros(orig_shape, out_dtype)

    a_flat = jnp.ravel(A)
    b_flat = jnp.ravel(B)

    rem = total % _LANES
    main = total - rem

    if rem == 0:
        # Hot path: free reshape in, free reshape out, no slice, no copies.
        rows = total // _LANES
        out2 = _run_kernel(a_flat.reshape(rows, _LANES),
                           b_flat.reshape(rows, _LANES),
                           mn, out_dtype, rows)
        return out2.reshape(orig_shape)

    # Rare fallback (total not a multiple of 128): kernel on the 128-aligned
    # prefix; the <128-element tail is computed with a tiny jnp expression
    # instead of materializing padded copies of both inputs.
    tail_c = (m_f32 * a_flat[main:].astype(jnp.float32)
              + n_f32 * b_flat[main:].astype(jnp.float32)).astype(out_dtype)
    if main == 0:
        return tail_c.reshape(orig_shape)
    rows = main // _LANES
    main_c = _run_kernel(a_flat[:main].reshape(rows, _LANES),
                         b_flat[:main].reshape(rows, _LANES),
                         mn, out_dtype, rows)
    return jnp.concatenate([main_c.reshape(-1), tail_c]).reshape(orig_shape)


if __name__ == "__main__":
    key = jax.random.PRNGKey(0)
    k_a, k_b, k_m, k_n = jax.random.split(key, 4)

    # Deterministic "parameters" (nn.Parameter(torch.randn(1)) analog).
    m = jax.random.normal(k_m, (1,), dtype=jnp.float32)[0]
    n = jax.random.normal(k_n, (1,), dtype=jnp.float32)[0]

    # Example inputs, NCHW-like shape.
    A = jax.random.normal(k_a, (2, 4, 16, 16), dtype=jnp.float32)
    B = jax.random.normal(k_b, (2, 4, 16, 16), dtype=jnp.float32)

    C = weighted_sum(A, B, m, n)
    C = jax.block_until_ready(C)

    # Correctness check against plain JAX reference.
    C_ref = m * A + n * B
    assert C.shape == A.shape
    assert C.dtype == C_ref.dtype
    assert jnp.allclose(C, C_ref, atol=1e-6, rtol=1e-6)

    print("KERNEL_OK")
</pallas_src>

<mosaic_0001>
module attributes {stable_mosaic.version = 11 : i64} {
  func.func @_weighted_sum_kernel(%arg0: i32, %arg1: memref<2xf32, #tpu.memory_space<smem>>, %arg2: memref<8x128xf32, #tpu.memory_space<vmem>>, %arg3: memref<8x128xf32, #tpu.memory_space<vmem>>, %arg4: memref<8x128xf32, #tpu.memory_space<vmem>>) attributes {dimension_semantics = [#tpu.dimension_semantics<parallel>], iteration_bounds = array<i64: 2>, scalar_prefetch = 1 : i64, scratch_operands = 0 : i64, tpu.core_type = #tpu.core_type<tc>, window_params = [{transform_indices = @transform_0, window_bounds = array<i64: 8, 128>}, {transform_indices = @transform_1, window_bounds = array<i64: 8, 128>}, {transform_indices = @transform_2, window_bounds = array<i64: 8, 128>}]} {
    %c0 = arith.constant 0 : index
    %0 = memref.load %arg1[%c0] : memref<2xf32, #tpu.memory_space<smem>>
    %c1 = arith.constant 1 : index
    %1 = memref.load %arg1[%c1] : memref<2xf32, #tpu.memory_space<smem>>
    %c0_0 = arith.constant 0 : index
    %c0_1 = arith.constant 0 : index
    %2 = vector.load %arg2[%c0_0, %c0_1] : memref<8x128xf32, #tpu.memory_space<vmem>>, vector<8x128xf32>
    %c0_2 = arith.constant 0 : index
    %c0_3 = arith.constant 0 : index
    %3 = vector.load %arg3[%c0_2, %c0_3] : memref<8x128xf32, #tpu.memory_space<vmem>>, vector<8x128xf32>
    %4 = vector.broadcast %0 : f32 to vector<8x128xf32>
    %5 = arith.mulf %4, %2 : vector<8x128xf32>
    %6 = vector.broadcast %1 : f32 to vector<8x128xf32>
    %7 = arith.mulf %6, %3 : vector<8x128xf32>
    %8 = arith.addf %5, %7 : vector<8x128xf32>
    %c0_4 = arith.constant 0 : index
    %c0_5 = arith.constant 0 : index
    %9 = vector.load %arg4[%c0_4, %c0_5] : memref<8x128xf32, #tpu.memory_space<vmem>>, vector<8x128xf32>
    tpu.vector_store %arg4[%c0_4, %c0_5], %8 {strides = array<i32>} : memref<8x128xf32, #tpu.memory_space<vmem>>, vector<8x128xf32>,
    return
  }
  func.func @transform_0(%arg0: i32, %arg1: memref<2xf32, #tpu.memory_space<smem>>) -> (i32, i32) {
    %c0_i32 = arith.constant 0 : i32
    %c0_i32_0 = arith.constant 0 : i32
    return %arg0, %c0_i32 : i32, i32
  }
  func.func @transform_1(%arg0: i32, %arg1: memref<2xf32, #tpu.memory_space<smem>>) -> (i32, i32) {
    %c0_i32 = arith.constant 0 : i32
    %c0_i32_0 = arith.constant 0 : i32
    return %arg0, %c0_i32 : i32, i32
  }
  func.func @transform_2(%arg0: i32, %arg1: memref<2xf32, #tpu.memory_space<smem>>) -> (i32, i32) {
    %c0_i32 = arith.constant 0 : i32
    %c0_i32_0 = arith.constant 0 : i32
    return %arg0, %c0_i32 : i32, i32
  }
}

</mosaic_0001>

<bundles_post_ra>
// kernel: tpu_custom_call.1
= control target key start
LH: loop header
LB: loop body
LE: loop exit
PB: predicated region body
PF: predicated region fallthrough
CT: control target
= control target key end

     0   :  { %s542_s15 = smov [#allocation3]   ;;  %s726_s0 = inlined_call_operand.hbm [shape: f32[2], index: 0, kind: input, shape index: {}]   ;;  %s727_s1 = inlined_call_operand.hbm [shape: f32[16,128], index: 1, kind: input, shape index: {}]   ;;  %s728_s2 = inlined_call_operand.hbm [shape: f32[16,128], index: 2, kind: input, shape index: {}]   ;;  %s729_s3 = inlined_call_operand.hbm [shape: f32[16,128], index: 3, kind: output, shape index: {}]  }
   0x1   :  { %s9_s14 = sshll.u32 %s726_s0, 4  ;;  %s10_s14 = int_to_ptr.hbm [resolvable:$true] %s9_s14 }
   0x2   :  { %12 = dma.hbm_to_smem %s10_s14, 16, %s542_s15, [#allocation2] }
   0x3   :  { %512 = dma.done.wait [#allocation2], 16 }
   0x4   :  { %513 = vsyncadd [#allocation2], 4294967280 }
   0x5   :  { %15 = sfence }
   0x6   :  { %16 = vsyncpa [#allocation5], 0 }
   0x7   :  { %18 = vsyncpa [#allocation5 + $0x1], 0 }
   0x8   :  { %19 = vsyncpa [#allocation8], 0 }
   0x9   :  { %21 = vsyncpa [#allocation8 + $0x1], 0 }
   0xa   :  { %22 = vsyncpa [#allocation6], 0 }
   0xb   :  { %24 = vsyncpa [#allocation6 + $0x1], 0  ;;  %s566_s16 = smov 0   ;;  %s568_s17 = smov 0  }
   0xc   :  { %s570_s18 = smov 0   ;;  %s572_s19 = smov 0  }
   0xd LB: > { %s587_s0 = sadd.s32 4294967295, %s540_s19   ;;  %s328_s20 = sadd.s32 4294967294, %s540_s19   ;;  %s540_s19 = sphi %s572_s19, %s740_s19   ;;  %s536_s18 = sphi %s570_s18, %s739_s18   ;;  %s532_s17 = sphi %s568_s17, %s738_s17   ;;  %s528_s16 = sphi %s566_s16, %s737_s16  }
   0xe   : > { %s591_s21 = sadd.s32 1, %s540_s19   ;;  %s37_s22 = sadd.s32 1, %s536_s18 }
   0xf   : > { %s34_s23 = ssub.s32 %s540_s19, %s591_s21  ;;  %p44_p0 = scmp.ne.s32.totalorder %s536_s18, %s532_s17 }
  0x10   : > { %p35_p1 = scmp.eq.s32.totalorder %s34_s23, 0  ;;  %p45_p2 = scmp.eq.s32.totalorder %s540_s19, 0 }
  0x11   : > { %p50_p3 = scmp.ne.s32.totalorder %s532_s17, %s528_s16  ;;  %p51_p4 = scmp.eq.s32.totalorder %s587_s0, 0 }
  0x12   : > { %s603_s24 = scalar_select %p35_p1, %s536_s18, %s37_s22  }
  0x13   : > { %p605_p5 = por %p45_p2, %p44_p0  ;;  %p609_p6 = por %p51_p4, %p50_p3 }
  0x14   : > { %p100_p7 = scmp.eq.s32.totalorder %s587_s0, 1  ;;  %p106_p8 = scmp.eq.s32.totalorder %s328_s20, 1 }
  0x15   : > { %p361_p10 = scmp.lt.s32.totalorder %s540_s19, 2  ;;  %s625_s29 = sand.u32 1, %s536_s18  }
  0x16   : > { %p616_p11 = por %p100_p7, %p44_p0  ;;  %p620_p12 = por %p106_p8, %p50_p3 }
  0x17   : > { %s332_s30 = sshll.u32 %s540_s19, 3  ;;  %s331_s4 = sshll.u32 %s625_s29, 3 }
  0x18   : > { %s134_s7 = scalar_lea.hbm %s727_s1, %s332_s30  ;;  %s130_s9 = scalar_lea.vmem [#allocation4], %s331_s4 }
  0x19   : > { %s136_s8 = sshll.u32 %s134_s7, 4  ;;  %s138_s10 = sshll.u32 %s130_s9, 4  ;;  %s137_s8 = int_to_ptr.hbm [resolvable:$true] %s136_s8  ;;  %s139_s10 = int_to_ptr.vmem [resolvable:$true] %s138_s10 }
  0x1a   : > { %p634_p13 = pnand %p361_p10, %p605_p5  ;;  %p335_p0 = scmp.ge.s32.totalorder %s540_s19, 1 }
  0x1b   : > { %p162_p1 = scmp.lt.s32.totalorder %s540_s19, 3  ;;  %s127_s12 = scalar_lea.sflag [#allocation5], %s625_s29 }
  0x1c   : > { %s408_s13 = sshra.s32 %s137_s8, 4  ;;  %p412_p3 = pneg %p634_p13  ;;  %s409_s13 = int_to_ptr.hbm [resolvable:$true] %s408_s13 }
  0x1d   : > { %s410_s14 = scalar_lea.hbm %s409_s13, 8  ;;  %s415_s22 = scalar_lea.hbm %s727_s1, 16 }
  0x1e   : > { %p411_p2 = scmp.ne.s32.totalorder %s409_s13, %s410_s14  ;;  %p416_p5 = scmp.lt.s32.totalorder %s409_s13, %s727_s1 }
  0x1f   : > { %p417_p8 = scmp.lt.s32.totalorder %s415_s22, %s410_s14 }
  0x20   : > { %p413_p4 = pnand %p412_p3, %p411_p2 }
  0x21   : > { %p418_p10 = por %p417_p8, %p416_p5 }
  0x22   : > { %p414_p7 = pneg %p413_p4 }
  0x24   : > { %p419_p9 = pnand %p418_p10, %p414_p7 }
  0x26   : > { %422 = shalt.err (!%p419_p9)
}
  0x27   : > { %353 = dma.hbm_to_vmem [thread:$0]  (!%p634_p13), %s137_s8, 128, %s139_s10, %s127_s12  }
  0x28   : > { %p658_p2 = pnand %p335_p0, %p162_p1  ;;  %s153_s9 = scalar_lea.hbm %s728_s2, %s332_s30 }
  0x29   : > { %s155_s13 = sshll.u32 %s153_s9, 4  ;;  %s149_s14 = scalar_lea.vmem [#allocation7], %s331_s4  ;;  %s156_s13 = int_to_ptr.hbm [resolvable:$true] %s155_s13 }
  0x2a   : > { %s157_s15 = sshll.u32 %s149_s14, 4  ;;  %s146_s20 = scalar_lea.sflag [#allocation8], %s625_s29  ;;  %s158_s15 = int_to_ptr.vmem [resolvable:$true] %s157_s15 }
  0x2b   : > { %s438_s22 = sshra.s32 %s156_s13, 4  ;;  %s445_s12 = scalar_lea.hbm %s728_s2, 16  ;;  %s439_s22 = int_to_ptr.hbm [resolvable:$true] %s438_s22 }
  0x2c   : > { %s440_s23 = scalar_lea.hbm %s439_s22, 8  ;;  %p446_p4 = scmp.lt.s32.totalorder %s439_s22, %s728_s2 }
  0x2d   : > { %p441_p9 = scmp.ne.s32.totalorder %s439_s22, %s440_s23  ;;  %p447_p7 = scmp.lt.s32.totalorder %s445_s12, %s440_s23 }
  0x2f   : > { %p443_p0 = pnand %p441_p9, %p412_p3  ;;  %p448_p5 = por %p447_p7, %p446_p4 }
  0x31   : > { %p444_p1 = pneg %p443_p0 }
  0x33   : > { %p449_p8 = pnand %p448_p5, %p444_p1 }
  0x35   : > { %452 = shalt.err (!%p449_p8)
}
  0x36   : > { %356 = dma.hbm_to_vmem [thread:$0]  (!%p634_p13), %s156_s13, 128, %s158_s15, %s146_s20  }
  0x37   : > { %166 = sbr.rel (%p658_p2) target bundleno = 79 (0x4f), region = 28  ;;  %s680_s29 = sand.u32 (!%p658_p2), 1, %s532_s17  }
  0x38   : > { %s336_s4 = sshll.u32 (!%p658_p2), %s680_s29, 3  ;;  %s169_s6 = scalar_lea.sflag (!%p658_p2), [#allocation5], %s680_s29 }
  0x39   : > { %s172_s7 = scalar_lea.vmem (!%p658_p2), [#allocation4], %s336_s4 }
  0x3c   : > { %515 = dma.done.wait (%p609_p6), %s169_s6, 128  }
  0x3d   : > { %517 = vsyncadd (%p609_p6), %s169_s6, 4294967168  ;;  %s179_s11 = scalar_lea.sflag [#allocation8], %s680_s29  ;;  %s182_s9 = scalar_lea.vmem [#allocation7], %s336_s4 }
  0x3e   : > { %519 = dma.done.wait (%p609_p6), %s179_s11, 128  }
  0x3f   : > { %521 = vsyncadd (%p609_p6), %s179_s11, 4294967168  ;;  %s209_s5 = sld [smem:[#allocation3]]  ;;  %s341_s14 = sshll.u32 %s587_s0, 3  ;;  %v211_v0 = vld [vmem:[%s172_s7] sm:$0xff]  ;;  %v212_v1 = vld [vmem:[%s182_s9] sm:$0xff] }
  0x40   : > { %s339_s13 = sld [smem:[#allocation3 + $0x1]]  ;;  %s230_s22 = scalar_lea.hbm %s729_s3, %s341_s14 }
  0x41   : > { %s208_s23 = scalar_lea.vmem [#allocation9], %s336_s4  ;;  %s234_s10 = sshll.u32 %s230_s22, 4  ;;  %s235_s10 = int_to_ptr.hbm [resolvable:$true] %s234_s10 }
  0x42   : > { %s232_s8 = sshll.u32 %s208_s23, 4  ;;  %s220_s26 = scalar_lea.sflag [#allocation6], %s680_s29  ;;  %s233_s8 = int_to_ptr.vmem [resolvable:$true] %s232_s8 }
  0x43   : > { %s482_s0 = sshra.s32 %s235_s10, 4  ;;  %s488_s6 = scalar_lea.hbm %s729_s3, 16  ;;  %s483_s0 = int_to_ptr.hbm [resolvable:$true] %s482_s0 }
  0x44   : > { %s484_s12 = scalar_lea.hbm %s483_s0, 8  ;;  %p489_p10 = scmp.lt.s32.totalorder %s483_s0, %s729_s3 }
  0x45   : > { %v213_v2 = vstv %s209_s5  ;;  %p485_p6 = scmp.ne.s32.totalorder %s483_s0, %s484_s12  ;;  %p490_p2 = scmp.lt.s32.totalorder %s488_s6, %s484_s12 }
  0x46   : > { %v214_v3 = vmul.f32 %v213_v2, %v211_v0  ;;  %v215_v4 = vstv %s339_s13 }
  0x47   : > { %v216_v5 = vmul.f32 %v215_v4, %v212_v1  ;;  %p486_p13 = pnand %p485_p6, %p616_p11  ;;  %p491_p9 = por %p490_p2, %p489_p10 }
  0x49   : > { %v217_v6 = vadd.f32 %v216_v5, %v214_v3  ;;  %p487_p3 = pneg %p486_p13 }
  0x4b   : > { %218 = vst [vmem:[%s208_s23] sm:$0xff] %v217_v6  ;;  %p492_p0 = pnand %p491_p9, %p487_p3 }
  0x4d   : > { %495 = shalt.err (!%p492_p0)
}
  0x4e   : > { %348 = dma.vmem_to_hbm [thread:$0]  (%p616_p11), %s233_s8, 128, %s235_s10, %s220_s26  }
  0x4f PF: > { %s246_s29 = sand.u32 1, %s528_s16   ;;  %p736_p1 = scmp.ge.s32.totalorder %s540_s19, 2 }
  0x50   : > { %s247_s11 = scalar_lea.sflag [#allocation6], %s246_s29 }
  0x51   : > { %p358_p4 = pnand %p736_p1, %p620_p12 }
  0x53   : > { %p359_p7 = pneg %p358_p4 }
  0x55   : > { %523 = dma.done.wait (%p359_p7), %s247_s11, 128  }
  0x56   : > { %525 = vsyncadd (%p359_p7), %s247_s11, 4294967168  ;;  %p27_p5 = scmp.ge.s32.totalorder %s591_s21, 4   ;;  %s737_s16 = smov %s532_s17 }
  0x57   : > { %s738_s17 = smov %s536_s18  ;;  %s739_s18 = smov %s603_s24 }
  0x58   : > { %s740_s19 = smov %s591_s21  ;;  %29 = sbr.rel (!%p27_p5) target bundleno = 13 (0xd), region = 86 }
  0x5d   :  { %253 = vsyncpa [#allocation5], 1 }
  0x5e   :  { %255 = vsyncpa [#allocation5 + $0x1], 1 }
  0x5f   :  { %256 = vsyncpa [#allocation8], 1 }
  0x60   :  { %258 = vsyncpa [#allocation8 + $0x1], 1 }
  0x61   :  { %259 = vsyncpa [#allocation6], 1 }
  0x62   :  { %261 = vsyncpa [#allocation6 + $0x1], 1 }

</bundles_post_ra>
